<compile_context>
chip_gen: v5e
topology: v5e:2x2
jax: 0.10.0
libtpu: 0.0.40
codegen_flags: <defaults>
</compile_context>

<pallas_src>
import functools

import jax
import jax.numpy as jnp
import numpy as np
from jax.experimental import pallas as pl
from jax.experimental.pallas import tpu as pltpu


# ----------------------------------------------------------------------------- kernel
def _fused_kernel(x46_ref, wrow_ref, x_ref, wcol_ref, out_ref, *, cg, c, eps):
    # ---- gate 1x1 conv on the 1x1 spatial input, produced directly as a (1, C) row ----
    w15_t = wrow_ref[:cg, :]                       # (Cg, C)  = W15^T
    b15 = wrow_ref[cg:cg + 1, :]                   # (1, C)
    g = jnp.sum(w15_t * x46_ref[...], axis=0, keepdims=True) + b15   # (1, C)
    scale = jax.nn.sigmoid(g)                      # (1, C)   EUP

    # ---- fold the gate into the 1x1-conv weight (scales input-channel columns) ----
    w16 = wcol_ref[:, :c]                          # (C, C)
    w_scaled = w16 * scale                         # (C, C)   tiny VPU pass
    y = jnp.dot(w_scaled, x_ref[...],
                preferred_element_type=jnp.float32)  # (C, HW) on the MXU, lane-dense

    # ---- training-mode BatchNorm over the pixel (lane) axis ----
    gamma = wcol_ref[:, c:c + 1]                   # (C, 1)
    beta = wcol_ref[:, c + 1:c + 2]                # (C, 1)
    mean = jnp.mean(y, axis=-1, keepdims=True)     # (C, 1)  cross-lane reduce (XLU)
    yc = y - mean                                  # two-pass (centered) variance
    var = jnp.mean(yc * yc, axis=-1, keepdims=True)
    a = jax.lax.rsqrt(var + eps) * gamma           # (C, 1) per-channel affine
    out_ref[...] = yc * a + beta                   # single full-width FMA pass


# ----------------------------------------------------------------------------- wrapper
@functools.partial(jax.jit, static_argnames=("eps",))
def module_forward(x46, x43, w15, b15, w16, gamma, beta, *, eps=1e-3):
    """x46: [1, Cg, 1, 1], x43: [1, C, H, W] (NCHW).  Returns [1, C, H, W]."""
    n, c, h, w = x43.shape
    cg = x46.shape[1]
    assert n == 1, "kernel assumes batch 1 (as in the original module)"
    hw = h * w

    # Free layout changes for the big tensor: channels -> sublanes, pixels -> lanes.
    x_flat = x43.reshape(c, hw).astype(jnp.float32)          # (C, HW)
    x46_col = x46.reshape(cg, 1).astype(jnp.float32)         # (Cg, 1)

    # Pack the tiny params into two blocks (constant in a real model -> pack once).
    wrow = jnp.concatenate(
        [w15.reshape(c, cg).T.astype(jnp.float32),           # (Cg, C)
         b15.reshape(1, c).astype(jnp.float32)], axis=0)     # -> (Cg+1, C)
    wcol = jnp.concatenate(
        [w16.reshape(c, c).astype(jnp.float32),              # (C, C)
         gamma.reshape(c, 1).astype(jnp.float32),
         beta.reshape(c, 1).astype(jnp.float32)], axis=1)    # -> (C, C+2)

    # Advisory cost hint so XLA schedules this tiny custom call correctly.
    flops = 2 * c * c * hw + 8 * c * hw + 4 * c * cg + 2 * c * c
    bytes_accessed = 4 * (2 * c * hw + (cg + 1) * c + c * (c + 2) + cg)
    cost = pl.CostEstimate(flops=flops, transcendentals=2 * c,
                           bytes_accessed=bytes_accessed)

    vmem_spec = pl.BlockSpec(memory_space=pltpu.MemorySpace.VMEM)

    # Grid-less call: whole problem resident in VMEM, no software-pipeline machinery.
    out_flat = pl.pallas_call(
        functools.partial(_fused_kernel, cg=cg, c=c, eps=eps),
        out_shape=jax.ShapeDtypeStruct((c, hw), jnp.float32),
        in_specs=[vmem_spec, vmem_spec, vmem_spec, vmem_spec],
        out_specs=vmem_spec,
        cost_estimate=cost,
    )(x46_col, wrow, x_flat, wcol)

    # (C, HW) -> [1, C, H, W] (free view)
    return out_flat.reshape(n, c, h, w)


# ----------------------------------------------------------------------------- main
if __name__ == "__main__":
    # Small shapes consistent with the module: N=1, gate channels=8, channels=32, H=W=16.
    N, CG, C, H, W = 1, 8, 32, 16, 16
    EPS = 1e-3

    key = jax.random.PRNGKey(0)
    k = jax.random.split(key, 8)
    x46 = jax.random.normal(k[0], (N, CG, 1, 1), jnp.float32)
    x43 = jax.random.normal(k[1], (N, C, H, W), jnp.float32)
    w15 = jax.random.normal(k[2], (C, CG, 1, 1), jnp.float32) * 0.2   # Conv2d(8->32) weight
    b15 = jax.random.normal(k[3], (C,), jnp.float32) * 0.1            # Conv2d(8->32) bias
    w16 = jax.random.normal(k[4], (C, C, 1, 1), jnp.float32) * 0.1    # Conv2d(32->32, no bias)
    gamma = 1.0 + 0.1 * jax.random.normal(k[5], (C,), jnp.float32)    # BN weight
    beta = 0.1 * jax.random.normal(k[6], (C,), jnp.float32)           # BN bias

    out = module_forward(x46, x43, w15, b15, w16, gamma, beta, eps=EPS)
    out = jax.block_until_ready(out)

    # pure-JAX reference (same math, NCHW)
    scale = jax.nn.sigmoid(
        jnp.einsum("oi,ni->no", w15.reshape(C, CG), x46.reshape(N, CG)) + b15[None, :]
    )                                                                  # (N, C)
    x49 = x43 * scale[:, :, None, None]
    y = jnp.einsum("oi,nihw->nohw", w16.reshape(C, C), x49)
    mu = y.mean(axis=(0, 2, 3), keepdims=True)
    var = y.var(axis=(0, 2, 3), keepdims=True)                         # biased, training-mode BN
    ref = (y - mu) * jax.lax.rsqrt(var + EPS) * gamma[None, :, None, None] \
        + beta[None, :, None, None]

    np.testing.assert_allclose(np.asarray(out), np.asarray(ref), rtol=1e-4, atol=1e-4)
    print("KERNEL_OK")
</pallas_src>

<mosaic_0001>
module attributes {stable_mosaic.version = 11 : i64} {
  func.func @_fused_kernel(%arg0: memref<8x1xf32, #tpu.memory_space<vmem>>, %arg1: memref<9x32xf32, #tpu.memory_space<vmem>>, %arg2: memref<32x256xf32, #tpu.memory_space<vmem>>, %arg3: memref<32x34xf32, #tpu.memory_space<vmem>>, %arg4: memref<32x256xf32, #tpu.memory_space<vmem>>) attributes {dimension_semantics = [], scalar_prefetch = 0 : i64, scratch_operands = 0 : i64, tpu.core_type = #tpu.core_type<tc>} {
    %c0 = arith.constant 0 : index
    %c0_0 = arith.constant 0 : index
    %0 = vector.load %arg1[%c0, %c0_0] : memref<9x32xf32, #tpu.memory_space<vmem>>, vector<8x32xf32>
    %c8 = arith.constant 8 : index
    %c0_1 = arith.constant 0 : index
    %1 = vector.load %arg1[%c8, %c0_1] : memref<9x32xf32, #tpu.memory_space<vmem>>, vector<1x32xf32>
    %c0_2 = arith.constant 0 : index
    %c0_3 = arith.constant 0 : index
    %2 = vector.load %arg0[%c0_2, %c0_3] : memref<8x1xf32, #tpu.memory_space<vmem>>, vector<8x1xf32>
    %3 = vector.broadcast %2 : vector<8x1xf32> to vector<8x32xf32>
    %4 = arith.mulf %0, %3 : vector<8x32xf32>
    %cst = arith.constant dense<0.000000e+00> : vector<32xf32>
    %5 = vector.multi_reduction <add>, %4, %cst [0] : vector<8x32xf32> to vector<32xf32>
    %6 = vector.shape_cast %5 : vector<32xf32> to vector<1x32xf32>
    %7 = arith.addf %6, %1 : vector<1x32xf32>
    %8 = arith.negf %7 : vector<1x32xf32>
    %9 = math.exp %8 : vector<1x32xf32>
    %cst_4 = arith.constant 1.000000e+00 : f32
    %10 = vector.broadcast %cst_4 : f32 to vector<1x32xf32>
    %11 = arith.addf %10, %9 : vector<1x32xf32>
    %12 = arith.divf %10, %11 : vector<1x32xf32>
    %c0_5 = arith.constant 0 : index
    %c0_6 = arith.constant 0 : index
    %13 = vector.load %arg3[%c0_5, %c0_6] : memref<32x34xf32, #tpu.memory_space<vmem>>, vector<32x32xf32>
    %14 = vector.broadcast %12 : vector<1x32xf32> to vector<32x32xf32>
    %15 = arith.mulf %13, %14 : vector<32x32xf32>
    %c0_7 = arith.constant 0 : index
    %c0_8 = arith.constant 0 : index
    %16 = vector.load %arg2[%c0_7, %c0_8] : memref<32x256xf32, #tpu.memory_space<vmem>>, vector<32x256xf32>
    %cst_9 = arith.constant dense<0.000000e+00> : vector<32x256xf32>
    %17 = tpu.matmul %15, %16, %cst_9 {dimension_numbers = #tpu.dot_dimension_numbers<[1], [0], [0], [1], [0, 0, 1, 1], [], []>} : vector<32x32xf32>, vector<32x256xf32>, vector<32x256xf32> -> vector<32x256xf32>
    %c0_10 = arith.constant 0 : index
    %c32 = arith.constant 32 : index
    %18 = vector.load %arg3[%c0_10, %c32] : memref<32x34xf32, #tpu.memory_space<vmem>>, vector<32x1xf32>
    %c0_11 = arith.constant 0 : index
    %c33 = arith.constant 33 : index
    %19 = vector.load %arg3[%c0_11, %c33] : memref<32x34xf32, #tpu.memory_space<vmem>>, vector<32x1xf32>
    %cst_12 = arith.constant dense<0.000000e+00> : vector<32xf32>
    %20 = vector.multi_reduction <add>, %17, %cst_12 [1] : vector<32x256xf32> to vector<32xf32>
    %21 = vector.shape_cast %20 : vector<32xf32> to vector<32x1xf32>
    %cst_13 = arith.constant 2.560000e+02 : f32
    %22 = vector.broadcast %cst_13 : f32 to vector<32x1xf32>
    %23 = arith.divf %21, %22 : vector<32x1xf32>
    %24 = vector.broadcast %23 : vector<32x1xf32> to vector<32x256xf32>
    %25 = arith.subf %17, %24 : vector<32x256xf32>
    %26 = arith.mulf %25, %25 : vector<32x256xf32>
    %cst_14 = arith.constant dense<0.000000e+00> : vector<32xf32>
    %27 = vector.multi_reduction <add>, %26, %cst_14 [1] : vector<32x256xf32> to vector<32xf32>
    %28 = vector.shape_cast %27 : vector<32xf32> to vector<32x1xf32>
    %cst_15 = arith.constant 2.560000e+02 : f32
    %29 = vector.broadcast %cst_15 : f32 to vector<32x1xf32>
    %30 = arith.divf %28, %29 : vector<32x1xf32>
    %cst_16 = arith.constant 1.000000e-03 : f32
    %31 = vector.broadcast %cst_16 : f32 to vector<32x1xf32>
    %32 = arith.addf %30, %31 : vector<32x1xf32>
    %33 = math.rsqrt %32 : vector<32x1xf32>
    %34 = arith.mulf %33, %18 : vector<32x1xf32>
    %35 = vector.broadcast %34 : vector<32x1xf32> to vector<32x256xf32>
    %36 = arith.mulf %25, %35 : vector<32x256xf32>
    %37 = vector.broadcast %19 : vector<32x1xf32> to vector<32x256xf32>
    %38 = arith.addf %36, %37 : vector<32x256xf32>
    %c0_17 = arith.constant 0 : index
    %c0_18 = arith.constant 0 : index
    %39 = vector.load %arg4[%c0_17, %c0_18] : memref<32x256xf32, #tpu.memory_space<vmem>>, vector<32x256xf32>
    tpu.vector_store %arg4[%c0_17, %c0_18], %38 {strides = array<i32>} : memref<32x256xf32, #tpu.memory_space<vmem>>, vector<32x256xf32>,
    return
  }
}

</mosaic_0001>

<bundles_post_ra>
// kernel: module_forward.1
= control target key start
LH: loop header
LB: loop body
LE: loop exit
PB: predicated region body
PF: predicated region fallthrough
CT: control target
= control target key end

     0   :  { %v354_v0 = vmov 0   ;;  %vm26_vm0 = vcmask 261120   ;;  %v355_v56 = vmov 256.0   ;;  %s521_s0 = inlined_call_operand.vmem [shape: f32[8,1], index: 0, kind: input, shape index: {}]   ;;  %s522_s1 = inlined_call_operand.vmem [shape: f32[9,32], index: 1, kind: input, shape index: {}]   ;;  %s523_s2 = inlined_call_operand.vmem [shape: f32[32,256], index: 2, kind: input, shape index: {}]   ;;  %s524_s3 = inlined_call_operand.vmem [shape: f32[32,34], index: 3, kind: input, shape index: {}]   ;;  %s525_s4 = inlined_call_operand.vmem [shape: f32[32,256], index: 4, kind: output, shape index: {}]  }
   0x1   :  { %333 = vset.pattern.permute.xlu0 %v354_v0  ;;  %v19_v1 = vld [vmem:[%s521_s0] sm:$0xff]  ;;  %v69_v8 = vld [vmem:[%s523_s2 + $0x30] sm:$0xff]  ;;  %v70_v9 = vld [vmem:[%s523_s2 + $0x38] sm:$0xff] }
   0x2   :  { %22 = vperm.xlu0 %333, %v19_v1   ;;  %v17_v2 = vld [vmem:[%s522_s1] sm:$0xff]  ;;  %95 = vmatpush.msra.mxu0 %v69_v8  ;;  %v68_v11 = vld [vmem:[%s523_s2 + $0x28] sm:$0xff]  ;;  %v65_v13 = vld [vmem:[%s523_s2 + $0x10] sm:$0xff] }
   0x3   :  { %v67_v10 = vld [vmem:[%s523_s2 + $0x20] sm:$0xff]  ;;  %321 = vmatpush.msra.mxu2 %v69_v8  ;;  %124 = vmatpush.msra.mxu1 %v70_v9  ;;  %v66_v14 = vld [vmem:[%s523_s2 + $0x18] sm:$0xff]  ;;  %v64_v17 = vld [vmem:[%s523_s2 + $0x8] sm:$0xff] }
   0x4   :  { %325 = vmatpush.msra.mxu3 %v70_v9  ;;  %96 = vmatpush.msra.mxu0 %v67_v10  ;;  %v63_v16 = vld [vmem:[%s523_s2] sm:$0xff]  ;;  %v18_v19 = vld [vmem:[%s522_s1 + $0x8] sm:$0x1]  ;;  %v425_v36 = vld [vmem:[%s524_s3 + $0x10] sm:$0xff] }
   0x5   :  { %322 = vmatpush.msra.mxu2 %v67_v10  ;;  %125 = vmatpush.msra.mxu1 %v68_v11  ;;  %v420_v35 = vld [vmem:[%s524_s3] sm:$0xff]  ;;  %v436_v40 = vld [vmem:[%s524_s3 + $0x8] sm:$0xff]  ;;  %v441_v41 = vld [vmem:[%s524_s3 + $0x18] sm:$0xff] }
   0x6   :  { %326 = vmatpush.msra.mxu3 %v68_v11  ;;  %97 = vmatpush.msra.mxu0 %v65_v13 }
   0x7   :  { %323 = vmatpush.msra.mxu2 %v65_v13  ;;  %126 = vmatpush.msra.mxu1 %v66_v14 }
   0x8   :  { %327 = vmatpush.msra.mxu3 %v66_v14  ;;  %98 = vmatpush.msra.mxu0 %v63_v16 }
   0x9   :  { %324 = vmatpush.msra.mxu2 %v63_v16  ;;  %127 = vmatpush.msra.mxu1 %v64_v17 }
   0xa   :  { %328 = vmatpush.msra.mxu3 %v64_v17 }
  0x74   :  { %v23_v3 = vpop.permute.xlu0 %22 }
  0x75   :  { %v25_v4 = vmul.f32 %v23_v3, %v17_v2 }
  0x77   :  { %v27_v5 = vsel %vm26_vm0, %v25_v4, 0.0 }
  0x78   :  { %v28_v6 = vrot.slane %v27_v5, 4 }
  0x7a   :  { %v29_v7 = vadd.f32 %v28_v6, %v27_v5 }
  0x7c   :  { %v30_v12 = vrot.slane %v29_v7, 2 }
  0x7e   :  { %v31_v15 = vadd.f32 %v30_v12, %v29_v7 }
  0x80   :  { %v32_v18 = vrot.slane %v31_v15, 1 }
  0x82   :  { %v33_v20 = vadd.f32 %v32_v18, %v31_v15 }
  0x84   :  { %v34_v21 = vadd.f32 %v33_v20, %v18_v19 }
  0x86   :  { %v312_v22 = vmul.f32 -1.442695, %v34_v21 }
  0x88   :  { %340 = vpow2.f32 %v312_v22 }
  0x8e   :  { %v341_v23 = vpop.eup %340 }
  0x8f   :  { %v38_v24 = vadd.f32 1.0, %v341_v23 }
  0x91   :  { %342 = vrcp.f32 %v38_v24  ;;  %v50_v28 = vand.u32 2147483648, %v38_v24  ;;  %v48_v30 = vand.u32 2147483647, %v38_v24  ;;  %vm44_vm2 = vweird.f32 %v38_v24 }
  0x92   :  { %344 = vrcp.f32 %v355_v56 }
  0x93   :  { %v51_v32 = vor.u32 1.1754944e-38, %v50_v28  ;;  %vm49_vm4 = vcmp.eq.f32.partialorder %v48_v30, 8.507059e+37 }
  0x97   :  { %v343_v25 = vpop.eup %342 }
  0x98   :  { %v40_v26 = vmul.f32 %v343_v25, %v38_v24  ;;  %vm45_vm1 = vweird.f32 %v343_v25  ;;  %v345_v57 = vpop.eup %344 }
  0x99   :  { %vm46_vm3 = vmor %vm44_vm2, %vm45_vm1  ;;  %v154_v58 = vmul.f32 256.0, %v345_v57  ;;  %vm158_vm5 = vweird.f32 %v345_v57 }
  0x9a   :  { %v41_v27 = vsub.f32 1.0, %v40_v26 }
  0x9b   :  { %v155_v59 = vsub.f32 1.0, %v154_v58 }
  0x9c   :  { %v42_v29 = vmul.f32 %v343_v25, %v41_v27  ;;  %v356_v27 = vmov 32  }
  0x9d   :  { %v156_v60 = vmul.f32 %v345_v57, %v155_v59  ;;  %334 = vset.pattern.permute.xlu2 %v356_v27  ;;  %335 = vset.pattern.permute.xlu1 %v356_v27 }
  0x9e   :  { %v43_v31 = vadd.f32 %v343_v25, %v42_v29  ;;  %336 = vset.pattern.permute.xlu0 %v356_v27 }
  0x9f   :  { %v157_v61 = vadd.f32 %v345_v57, %v156_v60 }
  0xa0   :  { %v47_v33 = vsel %vm46_vm3, %v343_v25, %v43_v31 }
  0xa1   :  { %v52_v34 = vsel %vm49_vm4, %v51_v32, %v47_v33  ;;  %v159_v62 = vsel %vm158_vm5, %v345_v57, %v157_v61 }
  0xa2   :  { %v58_v37 = vperm.slane %v52_v34, 0 }
  0xa4   :  { %v59_v38 = vmul.f32 %v58_v37, %v420_v35  ;;  %v61_v39 = vmul.f32 %v58_v37, %v425_v36  ;;  %v60_v42 = vmul.f32 %v58_v37, %v436_v40  ;;  %v62_v43 = vmul.f32 %v58_v37, %v441_v41 }
  0xa6   :  { %313 = vmatmul.msk.f32.vlgmr.msra.gmra.mxu0 %vm26_vm0, %v59_v38  ;;  %315 = vmatmul.msk.f32.vlgmr.msra.gmra.mxu2 %vm26_vm0, %v61_v39 }
  0xa7   :  { %317 = vmatmul.msk.f32.vlgmr.msra.gmra.mxu1 %vm26_vm0, %v59_v38  ;;  %319 = vmatmul.msk.f32.vlgmr.msra.gmra.mxu3 %vm26_vm0, %v61_v39 }
  0xae   :  { %314 = vmatmul.msk.f32.gmra.mxu0 %vm26_vm0, %v60_v42  ;;  %316 = vmatmul.msk.f32.gmra.mxu2 %vm26_vm0, %v62_v43 }
  0xaf   :  { %318 = vmatmul.msk.f32.gmra.mxu1 %vm26_vm0, %v60_v42  ;;  %320 = vmatmul.msk.f32.gmra.mxu3 %vm26_vm0, %v62_v43 }
 0x123   :  { %v100_v44 = vpop.f32.mrf.mxu0 }
 0x124   :  { %v129_v45 = vpop.f32.mrf.mxu1 }
 0x125   :  { %v141_v46 = vadd.f32 %v129_v45, %v100_v44 }
 0x127   :  { %142 = vadd.xlane.f32.xlu0 %v141_v46 }
 0x129   :  { %v106_v47 = vpop.f32.mrf.mxu2 }
 0x12a   :  { %v135_v48 = vpop.f32.mrf.mxu3 }
 0x12b   :  { %v103_v49 = vpop.f32.mrf.mxu0  ;;  %v147_v55 = vadd.f32 %v135_v48, %v106_v47 }
 0x12c   :  { %v132_v50 = vpop.f32.mrf.mxu1 }
 0x12d   :  { %v144_v51 = vadd.f32 %v132_v50, %v103_v49 }
 0x12f   :  { %145 = vadd.xlane.f32.xlu1 %v144_v51 }
 0x131   :  { %v109_v52 = vpop.f32.mrf.mxu2 }
 0x132   :  { %v138_v53 = vpop.f32.mrf.mxu3 }
 0x133   :  { %v150_v54 = vadd.f32 %v138_v53, %v109_v52 }
 0x135   :  { %151 = vadd.xlane.f32.xlu2 %v150_v54 }
 0x137   :  { %148 = vadd.xlane.f32.xlu1 %v147_v55 }
 0x19a   :  { %v143_v63 = vpop.xlane.xlu0 %142 }
 0x19b   :  { %v160_v0 = vmul.f32 %v159_v62, %v143_v63 }
 0x19d   :  { %v449_v1 = vsub.f32 %v100_v44, %v160_v0  ;;  %v451_v2 = vsub.f32 %v129_v45, %v160_v0 }
 0x19f   :  { %v172_v3 = vmul.f32 %v449_v1, %v449_v1  ;;  %v173_v4 = vmul.f32 %v451_v2, %v451_v2 }
 0x1a1   :  { %v180_v5 = vadd.f32 %v173_v4, %v172_v3 }
 0x1a2   :  { %v146_v6 = vpop.xlane.xlu1 %145 }
 0x1a3   :  { %v161_v7 = vmul.f32 %v159_v62, %v146_v6  ;;  %181 = vadd.xlane.f32.xlu2 %v180_v5 }
 0x1a5   :  { %v457_v8 = vsub.f32 %v103_v49, %v161_v7  ;;  %v459_v9 = vsub.f32 %v132_v50, %v161_v7 }
 0x1a7   :  { %v174_v10 = vmul.f32 %v457_v8, %v457_v8  ;;  %v175_v11 = vmul.f32 %v459_v9, %v459_v9 }
 0x1a8   :  { %v152_v12 = vpop.xlane.xlu2 %151 }
 0x1a9   :  { %v163_v13 = vmul.f32 %v159_v62, %v152_v12  ;;  %v183_v14 = vadd.f32 %v175_v11, %v174_v10 }
 0x1aa   :  { %v149_v15 = vpop.xlane.xlu1 %148 }
 0x1ab   :  { %v465_v16 = vsub.f32 %v109_v52, %v163_v13  ;;  %v467_v17 = vsub.f32 %v138_v53, %v163_v13  ;;  %v162_v18 = vmul.f32 %v159_v62, %v149_v15  ;;  %184 = vadd.xlane.f32.xlu1 %v183_v14 }
 0x1ad   :  { %v469_v19 = vsub.f32 %v106_v47, %v162_v18  ;;  %v471_v20 = vsub.f32 %v135_v48, %v162_v18  ;;  %v178_v21 = vmul.f32 %v465_v16, %v465_v16  ;;  %v179_v22 = vmul.f32 %v467_v17, %v467_v17 }
 0x1ae   :  { %v357_v18 = vmov 33  }
 0x1af   :  { %v176_v23 = vmul.f32 %v469_v19, %v469_v19  ;;  %v177_v24 = vmul.f32 %v471_v20, %v471_v20  ;;  %v189_v25 = vadd.f32 %v179_v22, %v178_v21 }
 0x1b1   :  { %v186_v26 = vadd.f32 %v177_v24, %v176_v23 }
 0x1b3   :  { %190 = vadd.xlane.f32.xlu1 %v189_v25  ;;  %187 = vadd.xlane.f32.xlu2 %v186_v26 }
 0x216   :  { %v182_v28 = vpop.xlane.xlu2 %181 }
 0x217   :  { %v192_v29 = vmul.f32 %v182_v28, %v159_v62 }
 0x219   :  { %v196_v30 = vadd.f32 0.001, %v192_v29 }
 0x21b   :  { %346 = vrsqrt.f32 %v196_v30  ;;  %vm206_vm7 = vweird.f32 %v196_v30 }
 0x21e   :  { %v185_v31 = vpop.xlane.xlu1 %184 }
 0x21f   :  { %v193_v32 = vmul.f32 %v185_v31, %v159_v62 }
 0x221   :  { %v347_v33 = vpop.eup %346  ;;  %v197_v34 = vadd.f32 0.001, %v193_v32 }
 0x222   :  { %v201_v37 = vmul.f32 %v347_v33, %v196_v30  ;;  %vm207_vm6 = vweird.f32 %v347_v33 }
 0x223   :  { %348 = vrsqrt.f32 %v197_v34  ;;  %vm208_vm8 = vmor %vm206_vm7, %vm207_vm6  ;;  %vm216_vm10 = vweird.f32 %v197_v34 }
 0x224   :  { %v202_v38 = vmul.f32 %v347_v33, %v201_v37 }
 0x226   :  { %v203_v39 = vmul.f32 0.5, %v202_v38  ;;  %v188_v42 = vpop.xlane.xlu2 %187  ;;  %v191_v43 = vpop.xlane.xlu1 %190 }
 0x227   :  { %v194_v44 = vmul.f32 %v188_v42, %v159_v62  ;;  %v195_v45 = vmul.f32 %v191_v43, %v159_v62 }
 0x228   :  { %v204_v46 = vsub.f32 1.5, %v203_v39 }
 0x229   :  { %v349_v47 = vpop.eup %348  ;;  %v198_v48 = vadd.f32 0.001, %v194_v44  ;;  %v199_v49 = vadd.f32 0.001, %v195_v45 }
 0x22a   :  { %v211_v50 = vmul.f32 %v349_v47, %v197_v34  ;;  %v205_v51 = vmul.f32 %v347_v33, %v204_v46  ;;  %vm217_vm9 = vweird.f32 %v349_v47 }
 0x22b   :  { %350 = vrsqrt.f32 %v198_v48  ;;  %vm218_vm11 = vmor %vm216_vm10, %vm217_vm9  ;;  %vm226_vm14 = vweird.f32 %v198_v48  ;;  %vm236_vm0 = vweird.f32 %v199_v49 }
 0x22c   :  { %v212_v52 = vmul.f32 %v349_v47, %v211_v50  ;;  %352 = vrsqrt.f32 %v199_v49  ;;  %v209_v53 = vsel %vm208_vm8, %v347_v33, %v205_v51 }
 0x22d   :  { %v240_v54 = vmul.f32 %v209_v53, %v420_v35 }
 0x22e   :  { %v213_v55 = vmul.f32 0.5, %v212_v52 }
 0x22f   :  { %246 = vperm.xlu2 %334, %v240_v54  }
 0x230   :  { %v214_v56 = vsub.f32 1.5, %v213_v55 }
 0x231   :  { %v351_v57 = vpop.eup %350 }
 0x232   :  { %v353_v58 = vpop.eup %352  ;;  %v221_v59 = vmul.f32 %v351_v57, %v198_v48  ;;  %v215_v60 = vmul.f32 %v349_v47, %v214_v56  ;;  %vm227_vm12 = vweird.f32 %v351_v57 }
 0x233   :  { %v231_v61 = vmul.f32 %v353_v58, %v199_v49  ;;  %vm237_vm13 = vweird.f32 %v353_v58  ;;  %vm228_vm15 = vmor %vm226_vm14, %vm227_vm12 }
 0x234   :  { %v222_v62 = vmul.f32 %v351_v57, %v221_v59  ;;  %v219_v63 = vsel %vm218_vm11, %v349_v47, %v215_v60  ;;  %vm238_vm1 = vmor %vm236_vm0, %vm237_vm13 }
 0x235   :  { %v232_v0 = vmul.f32 %v353_v58, %v231_v61  ;;  %v241_v3 = vmul.f32 %v219_v63, %v436_v40 }
 0x236   :  { %v223_v4 = vmul.f32 0.5, %v222_v62 }
 0x237   :  { %v233_v5 = vmul.f32 0.5, %v232_v0  ;;  %251 = vperm.xlu1 %335, %v241_v3  }
 0x238   :  { %v224_v6 = vsub.f32 1.5, %v223_v4 }
 0x239   :  { %v234_v7 = vsub.f32 1.5, %v233_v5 }
 0x23a   :  { %v225_v10 = vmul.f32 %v351_v57, %v224_v6 }
 0x23b   :  { %v235_v11 = vmul.f32 %v353_v58, %v234_v7 }
 0x23c   :  { %v229_v12 = vsel %vm228_vm15, %v351_v57, %v225_v10 }
 0x23d   :  { %v242_v13 = vmul.f32 %v229_v12, %v425_v36  ;;  %v239_v14 = vsel %vm238_vm1, %v353_v58, %v235_v11 }
 0x23e   :  { %v243_v15 = vmul.f32 %v239_v14, %v441_v41 }
 0x23f   :  { %256 = vperm.xlu2 %334, %v242_v13   ;;  %338 = vset.pattern.permute.xlu1 %v357_v18 }
 0x240   :  { %261 = vperm.xlu0 %336, %v243_v15   ;;  %279 = vperm.xlu1 %338, %v436_v40  }
 0x247   :  { %337 = vset.pattern.permute.xlu2 %v357_v18 }
 0x248   :  { %274 = vperm.xlu2 %337, %v420_v35   ;;  %289 = vperm.xlu1 %338, %v441_v41  }
 0x249   :  { %339 = vset.pattern.permute.xlu0 %v357_v18 }
 0x250   :  { %284 = vperm.xlu2 %337, %v425_v36  }
 0x289   :  { %v247_v21 = vpop.permute.xlu2 %246 }
 0x28a   :  { %v264_v23 = vmul.f32 %v247_v21, %v449_v1  ;;  %v265_v24 = vmul.f32 %v247_v21, %v451_v2 }
 0x299   :  { %v257_v22 = vpop.permute.xlu2 %256 }
 0x29a   :  { %v268_v35 = vmul.f32 %v257_v22, %v469_v19  ;;  %v269_v36 = vmul.f32 %v257_v22, %v471_v20 }
 0x2a2   :  { %v275_v25 = vpop.permute.xlu2 %274 }
 0x2a3   :  { %v292_v26 = vadd.f32 %v275_v25, %v264_v23  ;;  %v293_v27 = vadd.f32 %v275_v25, %v265_v24 }
 0x2a5   :  { %300 = vst [vmem:[%s525_s4] sm:$0xff] %v292_v26 }
 0x2a6   :  { %301 = vst [vmem:[%s525_s4 + $0x8] sm:$0xff] %v293_v27 }
 0x2a9   :  { %v252_v40 = vpop.permute.xlu1 %251 }
 0x2aa   :  { %v285_v41 = vpop.permute.xlu2 %284  ;;  %v266_v2 = vmul.f32 %v252_v40, %v457_v8  ;;  %v267_v29 = vmul.f32 %v252_v40, %v459_v9 }
 0x2ab   :  { %v296_v1 = vadd.f32 %v285_v41, %v268_v35  ;;  %v297_v28 = vadd.f32 %v285_v41, %v269_v36 }
 0x2ad   :  { %304 = vst [vmem:[%s525_s4 + $0x20] sm:$0xff] %v296_v1 }
 0x2ae   :  { %305 = vst [vmem:[%s525_s4 + $0x28] sm:$0xff] %v297_v28 }
 0x2b2   :  { %v280_v30 = vpop.permute.xlu1 %279  ;;  %v262_v20 = vpop.permute.xlu0 %261 }
 0x2b3   :  { %v294_v19 = vadd.f32 %v280_v30, %v266_v2  ;;  %v295_v31 = vadd.f32 %v280_v30, %v267_v29  ;;  %v270_v32 = vmul.f32 %v262_v20, %v465_v16  ;;  %v271_v33 = vmul.f32 %v262_v20, %v467_v17 }
 0x2b5   :  { %302 = vst [vmem:[%s525_s4 + $0x10] sm:$0xff] %v294_v19 }
 0x2b6   :  { %303 = vst [vmem:[%s525_s4 + $0x18] sm:$0xff] %v295_v31 }
 0x2ba   :  { %v290_v34 = vpop.permute.xlu1 %289 }
 0x2bb   :  { %v298_v8 = vadd.f32 %v290_v34, %v270_v32  ;;  %v299_v37 = vadd.f32 %v290_v34, %v271_v33 }
 0x2bd   :  { %306 = vst [vmem:[%s525_s4 + $0x30] sm:$0xff] %v298_v8 }
 0x2be   :  { %307 = vst [vmem:[%s525_s4 + $0x38] sm:$0xff] %v299_v37 }

</bundles_post_ra>
